<compile_context>
chip_gen: v7x
topology: tpu7x:2x2x1
jax: 0.10.0
libtpu: 0.0.40
codegen_flags: <defaults>
</compile_context>

<pallas_src>
import numpy as np
import jax
import jax.numpy as jnp
from jax.experimental import pallas as pl
from jax.experimental.pallas import tpu as pltpu


def make_kernel(k):
    """numpy port of stylegan2's make_kernel."""
    k = np.asarray(k, dtype=np.float64)
    if k.ndim == 1:
        k = np.outer(k, k)
    k = k / k.sum()
    return k


def _separable_factors(k2d):
    """Rank decomposition k2d = sum_r outer(gy_r, gx_r) (rank 1 for 1-D blur kernels)."""
    u, s, vt = np.linalg.svd(np.asarray(k2d, np.float64))
    if s.size == 0 or s[0] == 0.0:
        return [np.zeros(k2d.shape[0])], [np.zeros(k2d.shape[1])]
    keep = np.nonzero(s > s[0] * 1e-9)[0]
    gys = [u[:, r] * np.sqrt(s[r]) for r in keep]
    gxs = [vt[r, :] * np.sqrt(s[r]) for r in keep]
    return gys, gxs


def _fir_matrix(g, n_in, up, pad0, pad1):
    """[n_out, n_in] matrix of the 1-D op: zero-insert upsample by `up`, pad, convolve with g."""
    g = np.asarray(g, np.float64)
    kh = g.shape[0]
    n_out = n_in * up + pad0 + pad1 - kh + 1
    assert n_out > 0, "upfirdn2d output size must be positive"
    o = np.arange(n_out)[:, None]
    y = np.arange(n_in)[None, :]
    tap = pad0 + up * y - o              # which kernel tap input sample y hits at output o
    valid = (tap >= 0) & (tap < kh)
    idx = np.clip(kh - 1 - tap, 0, kh - 1)
    mat = np.where(valid, g[idx], 0.0).astype(np.float32)
    return mat, n_out


def _upfirdn2d_kernel(x_ref, a_ref, b_ref, o_ref):
    # x_ref: [TILE_B*H, W]        (TILE_B planes, H-major flattened)
    # a_ref: [R, H_out, H]        b_ref: [R, W, W_out]
    # o_ref: [TILE_B*H_out, W_out]
    rank, h_out, h = a_ref.shape
    tile_b = x_ref.shape[0] // h

    x = x_ref[...].astype(jnp.float32)                       # compute in f32

    # Pass 1 (W-axis FIR): one big MXU matmul over all planes in the tile per rank term.
    ts = [jnp.dot(x, b_ref[r], preferred_element_type=jnp.float32)   # [TILE_B*H, W_out]
          for r in range(rank)]

    # Pass 2 (H-axis FIR): per-plane banded matmul (static unroll), f32 accumulation.
    a_list = [a_ref[r] for r in range(rank)]                 # hoisted out of the plane loop
    for i in range(tile_b):
        acc = jnp.dot(a_list[0], ts[0][i * h:(i + 1) * h, :],
                      preferred_element_type=jnp.float32)     # [H_out, W_out]
        for r in range(1, rank):
            acc = acc + jnp.dot(a_list[r], ts[r][i * h:(i + 1) * h, :],
                                preferred_element_type=jnp.float32)
        o_ref[i * h_out:(i + 1) * h_out, :] = acc.astype(o_ref.dtype)


def _pick_tile_b(nc, h, w, h_out, w_out, rank, itemsize, budget_bytes=20 * 1024 * 1024):
    """Pick TILE_B (divisor of nc): >=128 matmul rows / ~1 MiB per block, within a VMEM budget."""

    def fits(d):
        stream = 2 * d * (h * w + h_out * w_out) * itemsize              # double-buffered blocks
        temps = 4 * (d * h * w + rank * d * h * w_out + h_out * w_out)   # f32 temporaries
        return stream + temps <= budget_bytes

    def aligned(d):   # keep flattened block's sublane dim x8-aligned (or full-extent)
        return d == nc or ((d * h) % 8 == 0 and (d * h_out) % 8 == 0)

    plane_stream = (h * w + h_out * w_out) * itemsize
    want = max(-(-128 // max(h, 1)), -(-(1 << 20) // max(plane_stream, 1)))
    cap = int(min(nc, 32, max(1, want)))                     # 32 caps the in-kernel unroll

    best_any = None
    for d in range(cap, 0, -1):
        if nc % d != 0 or not fits(d):
            continue
        if aligned(d):
            return d
        if best_any is None:
            best_any = d
    return best_any if best_any is not None else 1


def upfirdn2d_upsample(x, a_mats, b_mats, h_out, w_out):
    """x: [N, C, H, W] -> [N, C, H_out, W_out] via the Pallas kernel."""
    n, c, h, w = x.shape
    nc = n * c
    rank = int(a_mats.shape[0])
    itemsize = jnp.dtype(x.dtype).itemsize

    tile_b = _pick_tile_b(nc, h, w, h_out, w_out, rank, itemsize)
    grid = (nc // tile_b,)

    # Flatten plane/H axes in HBM (free metadata reshape) -> lane-dense 2-D blocks.
    x2 = x.reshape(nc * h, w)

    # Scoped-VMEM budget: double-buffered streaming blocks + filter matrices + f32 temporaries.
    stream = 2 * tile_b * (h * w + h_out * w_out) * itemsize
    consts = rank * (h_out * h + w * w_out) * 4
    temps = 4 * (tile_b * h * w + rank * tile_b * h * w_out + h_out * w_out)
    vmem_limit = int(min(max(stream + consts + temps + (4 << 20), 32 << 20), 64 << 20))

    out2 = pl.pallas_call(
        _upfirdn2d_kernel,
        out_shape=jax.ShapeDtypeStruct((nc * h_out, w_out), x.dtype),
        grid_spec=pltpu.PrefetchScalarGridSpec(
            num_scalar_prefetch=0,
            grid=grid,
            in_specs=[
                pl.BlockSpec((tile_b * h, w), lambda i: (i, 0)),
                pl.BlockSpec((rank, h_out, h), lambda i: (0, 0, 0)),   # resident (constant index)
                pl.BlockSpec((rank, w, w_out), lambda i: (0, 0, 0)),   # resident (constant index)
            ],
            out_specs=pl.BlockSpec((tile_b * h_out, w_out), lambda i: (i, 0)),
        ),
        compiler_params=pltpu.CompilerParams(
            dimension_semantics=("parallel",),   # shard planes across TCs on v7x; neutral on v5e/v6e
            vmem_limit_bytes=vmem_limit,
        ),
    )(x2, a_mats, b_mats)
    return out2.reshape(n, c, h_out, w_out)


class Upsample:
    """JAX/Pallas port of the PyTorch Upsample module (upfirdn2d, up=factor, down=1)."""

    def __init__(self, kernel, factor=2):
        self.factor = int(factor)
        k2d = make_kernel(kernel) * (self.factor ** 2)
        self.kernel = k2d.astype(np.float32)              # mirrors register_buffer('kernel', ...)
        p = k2d.shape[0] - self.factor
        self.pad = ((p + 1) // 2 + self.factor - 1, p // 2)
        self._gy, self._gx = _separable_factors(k2d)
        self._mat_cache = {}                              # (H, W) -> (A, B, H_out, W_out)

    def _matrices(self, h, w):
        key = (h, w)
        if key not in self._mat_cache:
            pad0, pad1 = self.pad
            a_rows, b_rows = [], []
            h_out = w_out = None
            for gy, gx in zip(self._gy, self._gx):
                a_r, h_out = _fir_matrix(gy, h, self.factor, pad0, pad1)
                bw_r, w_out = _fir_matrix(gx, w, self.factor, pad0, pad1)
                a_rows.append(a_r)
                b_rows.append(bw_r.T)                     # [W, W_out]
            self._mat_cache[key] = (jnp.asarray(np.stack(a_rows)),
                                    jnp.asarray(np.stack(b_rows)),
                                    h_out, w_out)
        return self._mat_cache[key]

    def __call__(self, x):
        n, c, h, w = x.shape
        a_mats, b_mats, h_out, w_out = self._matrices(h, w)
        return upfirdn2d_upsample(x, a_mats, b_mats, h_out, w_out)


def upfirdn2d_reference(x, kernel2d, up, pad):
    """Plain-JAX reference with upfirdn2d_native semantics (zero-insert, pad, conv w/ flipped kernel)."""
    pad0, pad1 = pad
    n, c, h, w = x.shape
    kh, kw = kernel2d.shape
    z = jnp.zeros((n, c, h * up, w * up), x.dtype)
    z = z.at[:, :, ::up, ::up].set(x)
    z = jnp.pad(z, ((0, 0), (0, 0), (pad0, pad1), (pad0, pad1)))
    h_out = h * up + pad0 + pad1 - kh + 1
    w_out = w * up + pad0 + pad1 - kw + 1
    wf = kernel2d[::-1, ::-1]
    out = jnp.zeros((n, c, h_out, w_out), jnp.float32)
    for i in range(kh):
        for j in range(kw):
            out = out + wf[i, j] * z[:, :, i:i + h_out, j:j + w_out].astype(jnp.float32)
    return out.astype(x.dtype)


if __name__ == "__main__":
    key = jax.random.PRNGKey(0)
    N, C, H, W = 2, 4, 16, 16
    x = jax.random.normal(key, (N, C, H, W), dtype=jnp.float32)

    up = Upsample(kernel=[1, 3, 3, 1], factor=2)
    out = jax.block_until_ready(up(x))
    assert out.shape == (N, C, 2 * H, 2 * W), out.shape

    ref = jax.block_until_ready(
        upfirdn2d_reference(x, jnp.asarray(up.kernel), up.factor, up.pad))
    assert jnp.allclose(out, ref, atol=1e-4, rtol=1e-4), float(jnp.max(jnp.abs(out - ref)))

    print("KERNEL_OK")
</pallas_src>

<mosaic_0001>
module attributes {stable_mosaic.version = 11 : i64} {
  func.func @_upfirdn2d_kernel(%arg0: i32, %arg1: memref<128x16xf32, #tpu.memory_space<vmem>>, %arg2: memref<1x32x16xf32, #tpu.memory_space<vmem>>, %arg3: memref<1x16x32xf32, #tpu.memory_space<vmem>>, %arg4: memref<256x32xf32, #tpu.memory_space<vmem>>) attributes {dimension_semantics = [#tpu.dimension_semantics<parallel>], iteration_bounds = array<i64: 1>, scalar_prefetch = 0 : i64, scratch_operands = 0 : i64, tpu.core_type = #tpu.core_type<tc>, window_params = [{transform_indices = @transform_0, window_bounds = array<i64: 128, 16>}, {pipeline_mode = #tpu.pipeline_mode<synchronous>, transform_indices = @transform_1, window_bounds = array<i64: 1, 32, 16>}, {pipeline_mode = #tpu.pipeline_mode<synchronous>, transform_indices = @transform_2, window_bounds = array<i64: 1, 16, 32>}, {transform_indices = @transform_3, window_bounds = array<i64: 256, 32>}]} {
    %c0 = arith.constant 0 : index
    %c0_0 = arith.constant 0 : index
    %0 = vector.load %arg1[%c0, %c0_0] : memref<128x16xf32, #tpu.memory_space<vmem>>, vector<128x16xf32>
    %c0_1 = arith.constant 0 : index
    %c0_2 = arith.constant 0 : index
    %c0_3 = arith.constant 0 : index
    %1 = vector.load %arg3[%c0_1, %c0_2, %c0_3] : memref<1x16x32xf32, #tpu.memory_space<vmem>>, vector<1x16x32xf32>
    %2 = vector.shape_cast %1 : vector<1x16x32xf32> to vector<16x32xf32>
    %cst = arith.constant dense<0.000000e+00> : vector<128x32xf32>
    %3 = tpu.matmul %0, %2, %cst {dimension_numbers = #tpu.dot_dimension_numbers<[1], [0], [0], [1], [0, 0, 1, 1], [], []>} : vector<128x16xf32>, vector<16x32xf32>, vector<128x32xf32> -> vector<128x32xf32>
    %c0_4 = arith.constant 0 : index
    %c0_5 = arith.constant 0 : index
    %c0_6 = arith.constant 0 : index
    %4 = vector.load %arg2[%c0_4, %c0_5, %c0_6] : memref<1x32x16xf32, #tpu.memory_space<vmem>>, vector<1x32x16xf32>
    %5 = vector.shape_cast %4 : vector<1x32x16xf32> to vector<32x16xf32>
    %6 = vector.extract_strided_slice %3 {offsets = [0, 0], sizes = [16, 32], strides = [1, 1]} : vector<128x32xf32> to vector<16x32xf32>
    %cst_7 = arith.constant dense<0.000000e+00> : vector<32x32xf32>
    %7 = tpu.matmul %5, %6, %cst_7 {dimension_numbers = #tpu.dot_dimension_numbers<[1], [0], [0], [1], [0, 0, 1, 1], [], []>} : vector<32x16xf32>, vector<16x32xf32>, vector<32x32xf32> -> vector<32x32xf32>
    %c0_8 = arith.constant 0 : index
    %c0_9 = arith.constant 0 : index
    %8 = vector.load %arg4[%c0_8, %c0_9] : memref<256x32xf32, #tpu.memory_space<vmem>>, vector<32x32xf32>
    tpu.vector_store %arg4[%c0_8, %c0_9], %7 {strides = array<i32>} : memref<256x32xf32, #tpu.memory_space<vmem>>, vector<32x32xf32>,
    %9 = vector.extract_strided_slice %3 {offsets = [16, 0], sizes = [16, 32], strides = [1, 1]} : vector<128x32xf32> to vector<16x32xf32>
    %cst_10 = arith.constant dense<0.000000e+00> : vector<32x32xf32>
    %10 = tpu.matmul %5, %9, %cst_10 {dimension_numbers = #tpu.dot_dimension_numbers<[1], [0], [0], [1], [0, 0, 1, 1], [], []>} : vector<32x16xf32>, vector<16x32xf32>, vector<32x32xf32> -> vector<32x32xf32>
    %c32 = arith.constant 32 : index
    %c0_11 = arith.constant 0 : index
    %11 = vector.load %arg4[%c32, %c0_11] : memref<256x32xf32, #tpu.memory_space<vmem>>, vector<32x32xf32>
    tpu.vector_store %arg4[%c32, %c0_11], %10 {strides = array<i32>} : memref<256x32xf32, #tpu.memory_space<vmem>>, vector<32x32xf32>,
    %12 = vector.extract_strided_slice %3 {offsets = [32, 0], sizes = [16, 32], strides = [1, 1]} : vector<128x32xf32> to vector<16x32xf32>
    %cst_12 = arith.constant dense<0.000000e+00> : vector<32x32xf32>
    %13 = tpu.matmul %5, %12, %cst_12 {dimension_numbers = #tpu.dot_dimension_numbers<[1], [0], [0], [1], [0, 0, 1, 1], [], []>} : vector<32x16xf32>, vector<16x32xf32>, vector<32x32xf32> -> vector<32x32xf32>
    %c64 = arith.constant 64 : index
    %c0_13 = arith.constant 0 : index
    %14 = vector.load %arg4[%c64, %c0_13] : memref<256x32xf32, #tpu.memory_space<vmem>>, vector<32x32xf32>
    tpu.vector_store %arg4[%c64, %c0_13], %13 {strides = array<i32>} : memref<256x32xf32, #tpu.memory_space<vmem>>, vector<32x32xf32>,
    %15 = vector.extract_strided_slice %3 {offsets = [48, 0], sizes = [16, 32], strides = [1, 1]} : vector<128x32xf32> to vector<16x32xf32>
    %cst_14 = arith.constant dense<0.000000e+00> : vector<32x32xf32>
    %16 = tpu.matmul %5, %15, %cst_14 {dimension_numbers = #tpu.dot_dimension_numbers<[1], [0], [0], [1], [0, 0, 1, 1], [], []>} : vector<32x16xf32>, vector<16x32xf32>, vector<32x32xf32> -> vector<32x32xf32>
    %c96 = arith.constant 96 : index
    %c0_15 = arith.constant 0 : index
    %17 = vector.load %arg4[%c96, %c0_15] : memref<256x32xf32, #tpu.memory_space<vmem>>, vector<32x32xf32>
    tpu.vector_store %arg4[%c96, %c0_15], %16 {strides = array<i32>} : memref<256x32xf32, #tpu.memory_space<vmem>>, vector<32x32xf32>,
    %18 = vector.extract_strided_slice %3 {offsets = [64, 0], sizes = [16, 32], strides = [1, 1]} : vector<128x32xf32> to vector<16x32xf32>
    %cst_16 = arith.constant dense<0.000000e+00> : vector<32x32xf32>
    %19 = tpu.matmul %5, %18, %cst_16 {dimension_numbers = #tpu.dot_dimension_numbers<[1], [0], [0], [1], [0, 0, 1, 1], [], []>} : vector<32x16xf32>, vector<16x32xf32>, vector<32x32xf32> -> vector<32x32xf32>
    %c128 = arith.constant 128 : index
    %c0_17 = arith.constant 0 : index
    %20 = vector.load %arg4[%c128, %c0_17] : memref<256x32xf32, #tpu.memory_space<vmem>>, vector<32x32xf32>
    tpu.vector_store %arg4[%c128, %c0_17], %19 {strides = array<i32>} : memref<256x32xf32, #tpu.memory_space<vmem>>, vector<32x32xf32>,
    %21 = vector.extract_strided_slice %3 {offsets = [80, 0], sizes = [16, 32], strides = [1, 1]} : vector<128x32xf32> to vector<16x32xf32>
    %cst_18 = arith.constant dense<0.000000e+00> : vector<32x32xf32>
    %22 = tpu.matmul %5, %21, %cst_18 {dimension_numbers = #tpu.dot_dimension_numbers<[1], [0], [0], [1], [0, 0, 1, 1], [], []>} : vector<32x16xf32>, vector<16x32xf32>, vector<32x32xf32> -> vector<32x32xf32>
    %c160 = arith.constant 160 : index
    %c0_19 = arith.constant 0 : index
    %23 = vector.load %arg4[%c160, %c0_19] : memref<256x32xf32, #tpu.memory_space<vmem>>, vector<32x32xf32>
    tpu.vector_store %arg4[%c160, %c0_19], %22 {strides = array<i32>} : memref<256x32xf32, #tpu.memory_space<vmem>>, vector<32x32xf32>,
    %24 = vector.extract_strided_slice %3 {offsets = [96, 0], sizes = [16, 32], strides = [1, 1]} : vector<128x32xf32> to vector<16x32xf32>
    %cst_20 = arith.constant dense<0.000000e+00> : vector<32x32xf32>
    %25 = tpu.matmul %5, %24, %cst_20 {dimension_numbers = #tpu.dot_dimension_numbers<[1], [0], [0], [1], [0, 0, 1, 1], [], []>} : vector<32x16xf32>, vector<16x32xf32>, vector<32x32xf32> -> vector<32x32xf32>
    %c192 = arith.constant 192 : index
    %c0_21 = arith.constant 0 : index
    %26 = vector.load %arg4[%c192, %c0_21] : memref<256x32xf32, #tpu.memory_space<vmem>>, vector<32x32xf32>
    tpu.vector_store %arg4[%c192, %c0_21], %25 {strides = array<i32>} : memref<256x32xf32, #tpu.memory_space<vmem>>, vector<32x32xf32>,
    %27 = vector.extract_strided_slice %3 {offsets = [112, 0], sizes = [16, 32], strides = [1, 1]} : vector<128x32xf32> to vector<16x32xf32>
    %cst_22 = arith.constant dense<0.000000e+00> : vector<32x32xf32>
    %28 = tpu.matmul %5, %27, %cst_22 {dimension_numbers = #tpu.dot_dimension_numbers<[1], [0], [0], [1], [0, 0, 1, 1], [], []>} : vector<32x16xf32>, vector<16x32xf32>, vector<32x32xf32> -> vector<32x32xf32>
    %c224 = arith.constant 224 : index
    %c0_23 = arith.constant 0 : index
    %29 = vector.load %arg4[%c224, %c0_23] : memref<256x32xf32, #tpu.memory_space<vmem>>, vector<32x32xf32>
    tpu.vector_store %arg4[%c224, %c0_23], %28 {strides = array<i32>} : memref<256x32xf32, #tpu.memory_space<vmem>>, vector<32x32xf32>,
    return
  }
  func.func @transform_0(%arg0: i32) -> (i32, i32) {
    %c0_i32 = arith.constant 0 : i32
    %c0_i32_0 = arith.constant 0 : i32
    return %arg0, %c0_i32 : i32, i32
  }
  func.func @transform_1(%arg0: i32) -> (i32, i32, i32) {
    %c0_i32 = arith.constant 0 : i32
    %c0_i32_0 = arith.constant 0 : i32
    %c0_i32_1 = arith.constant 0 : i32
    %c0_i32_2 = arith.constant 0 : i32
    return %c0_i32, %c0_i32_0, %c0_i32_1 : i32, i32, i32
  }
  func.func @transform_2(%arg0: i32) -> (i32, i32, i32) {
    %c0_i32 = arith.constant 0 : i32
    %c0_i32_0 = arith.constant 0 : i32
    %c0_i32_1 = arith.constant 0 : i32
    %c0_i32_2 = arith.constant 0 : i32
    return %c0_i32, %c0_i32_0, %c0_i32_1 : i32, i32, i32
  }
  func.func @transform_3(%arg0: i32) -> (i32, i32) {
    %c0_i32 = arith.constant 0 : i32
    %c0_i32_0 = arith.constant 0 : i32
    return %arg0, %c0_i32 : i32, i32
  }
}

</mosaic_0001>

<bundles_post_ra>
// kernel: tpu_custom_call.1
= control target key start
LH: loop header
LB: loop body
LE: loop exit
PB: predicated region body
PF: predicated region fallthrough
CT: control target
= control target key end

     0   :  { %vm32_vm0 = vcmask 130048   ;;  %vm327_vm1 = vcmask 261120   ;;  %s1499_s2 = inlined_call_operand.vmem [shape: f32[1,16,32], index: 2, kind: input, shape index: {}]   ;;  %s1500_s0 = inlined_call_operand.vmem [shape: f32[128,16], index: 0, kind: input, shape index: {}]   ;;  %s1501_s1 = inlined_call_operand.vmem [shape: f32[1,32,16], index: 1, kind: input, shape index: {}]   ;;  %s1502_s3 = inlined_call_operand.vmem [shape: f32[256,32], index: 3, kind: output, shape index: {}]  }
   0x1   :  { %v30_v0 = vld [vmem:[%s1499_s2] sm:$0xff]  ;;  %v31_v1 = vld [vmem:[%s1499_s2 + $0x8] sm:$0xff]  ;;  %v16_v5 = vld [vmem:[%s1500_s0 + $0x10] sm:$0xff] }
   0x2   :  { %v14_v2 = vld [vmem:[%s1500_s0] sm:$0xff]  ;;  %v1181_v3 = vpack.c.bf16 %v31_v1, %v30_v0  ;;  %v15_v4 = vld [vmem:[%s1500_s0 + $0x8] sm:$0xff]  ;;  %v17_v6 = vld [vmem:[%s1500_s0 + $0x18] sm:$0xff] }
   0x3   :  { %1077 = vmatprep.mubr.msk.f32.mxu0 %vm32_vm0, %v14_v2  ;;  %v18_v7 = vld [vmem:[%s1500_s0 + $0x20] sm:$0xff]  ;;  %v19_v8 = vld [vmem:[%s1500_s0 + $0x28] sm:$0xff]  ;;  %v20_v9 = vld [vmem:[%s1500_s0 + $0x30] sm:$0xff] }
   0x4   :  { %1182 = vmatprep.subr.bf16.mxu0 %v1181_v3  ;;  %v21_v10 = vld [vmem:[%s1500_s0 + $0x38] sm:$0xff]  ;;  %v22_v11 = vld [vmem:[%s1500_s0 + $0x40] sm:$0xff]  ;;  %v23_v12 = vld [vmem:[%s1500_s0 + $0x48] sm:$0xff] }
   0x5   :  { %1184 = vmatpush3.bf16.msra.mxu0 %v1181_v3  ;;  %v24_v13 = vld [vmem:[%s1500_s0 + $0x50] sm:$0xff]  ;;  %v25_v14 = vld [vmem:[%s1500_s0 + $0x58] sm:$0xff]  ;;  %v26_v15 = vld [vmem:[%s1500_s0 + $0x60] sm:$0xff] }
   0x6   :  { %v27_v16 = vld [vmem:[%s1500_s0 + $0x68] sm:$0xff]  ;;  %v28_v17 = vld [vmem:[%s1500_s0 + $0x70] sm:$0xff]  ;;  %v29_v18 = vld [vmem:[%s1500_s0 + $0x78] sm:$0xff] }
   0x7   :  { %v1310_v19 = vld [vmem:[%s1501_s1] sm:$0xff]  ;;  %v1319_v25 = vld [vmem:[%s1501_s1 + $0x8] sm:$0xff]  ;;  %v228_v27 = vld [vmem:[%s1501_s1 + $0x10] sm:$0xff] }
   0x8   :  { %1078 = vmatmul.mubr.msk.f32.vlgmr.msra.gmra.mrb[0].mxu0 %vm32_vm0, %v15_v4  ;;  %1105 = vmatprep.mubr.msk.f32.mxu1 %vm32_vm0, %v1310_v19  ;;  %v229_v30 = vld [vmem:[%s1501_s1 + $0x18] sm:$0xff] }
   0x9   :  { %1080 = vmatprep.mubr.msk.f32.mxu0 %vm32_vm0, %v16_v5 }
   0xc   :  { %1081 = vmatmul.mubr.msk.f32.gmra.mrb[2].mxu0 %vm32_vm0, %v17_v6 }
   0xd   :  { %1083 = vmatprep.mubr.msk.f32.mxu0 %vm32_vm0, %v18_v7 }
  0x10   :  { %1084 = vmatmul.mubr.msk.f32.gmra.mrb[4].mxu0 %vm32_vm0, %v19_v8 }
  0x11   :  { %1086 = vmatprep.mubr.msk.f32.mxu0 %vm32_vm0, %v20_v9 }
  0x14   :  { %1087 = vmatmul.mubr.msk.f32.gmra.mrb[6].mxu0 %vm32_vm0, %v21_v10 }
  0x15   :  { %1089 = vmatprep.mubr.msk.f32.mxu0 %vm32_vm0, %v22_v11 }
  0x18   :  { %1090 = vmatmul.mubr.msk.f32.gmra.mrb[8].mxu0 %vm32_vm0, %v23_v12 }
  0x19   :  { %1092 = vmatprep.mubr.msk.f32.mxu0 %vm32_vm0, %v24_v13 }
  0x1c   :  { %1093 = vmatmul.mubr.msk.f32.gmra.mrb[10].mxu0 %vm32_vm0, %v25_v14 }
  0x1d   :  { %1095 = vmatprep.mubr.msk.f32.mxu0 %vm32_vm0, %v26_v15 }
  0x20   :  { %1096 = vmatmul.mubr.msk.f32.gmra.mrb[12].mxu0 %vm32_vm0, %v27_v16 }
  0x21   :  { %1098 = vmatprep.mubr.msk.f32.mxu0 %vm32_vm0, %v28_v17 }
  0x24   :  { %1099 = vmatmul.mubr.msk.f32.gmra.mrb[14].mxu0 %vm32_vm0, %v29_v18 }
  0x25   :  { %1145 = vmatprep.mubr.msk.f32.mxu0 %vm32_vm0, %v1310_v19 }
  0xdb   :  { %v1079_v20 = vpop.f32.mrb[0].mxu0 }
  0xdc   :  { %v147_v21 = vpop.f32.mrb[1].mxu0 }
  0xdd   :  { %v1185_v22 = vpack.c.bf16 %v1079_v20, %v147_v21 }
  0xdf   :  { %v1082_v23 = vpop.f32.mrb[2].mxu0  ;;  %1186 = vmatprep.subr.bf16.mxu1 %v1185_v22 }
  0xe0   :  { %v157_v24 = vpop.f32.mrb[3].mxu0  ;;  %1188 = vmatpush3.bf16.msra.mxu1 %v1185_v22 }
  0xe1   :  { %v1189_v26 = vpack.c.bf16 %v1082_v23, %v157_v24 }
  0xe3   :  { %v1085_v28 = vpop.f32.mrb[4].mxu0  ;;  %1106 = vmatmul.mubr.msk.f32.vlgmr.msra.gmra.mrb[0].mxu1 %vm32_vm0, %v1319_v25  ;;  %1190 = vmatprep.subr.bf16.mxu1 %v1189_v26 }
  0xe4   :  { %v167_v29 = vpop.f32.mrb[5].mxu0  ;;  %1192 = vmatpush3.bf16.msra.mxu1 %v1189_v26  ;;  %1108 = vmatprep.mubr.msk.f32.mxu1 %vm32_vm0, %v228_v27 }
  0xe5   :  { %v1193_v31 = vpack.c.bf16 %v1085_v28, %v167_v29 }
  0xe7   :  { %v1088_v32 = vpop.f32.mrb[6].mxu0  ;;  %1109 = vmatmul.mubr.msk.f32.gmra.mrb[2].mxu1 %vm32_vm0, %v229_v30  ;;  %1194 = vmatprep.subr.bf16.mxu1 %v1193_v31 }
  0xe8   :  { %v177_v33 = vpop.f32.mrb[7].mxu0  ;;  %1115 = vmatprep.mubr.msk.f32.mxu1 %vm32_vm0, %v1310_v19 }
  0xe9   :  { %v1197_v34 = vpack.c.bf16 %v1088_v32, %v177_v33 }
  0xeb   :  { %v1091_v35 = vpop.f32.mrb[8].mxu0  ;;  %1116 = vmatmul.mubr.msk.f32.vlgmr.msra.gmra.mrb[4].mxu1 %vm32_vm0, %v1319_v25 }
  0xec   :  { %1196 = vmatpush3.bf16.msra.mxu1 %v1193_v31  ;;  %v187_v36 = vpop.f32.mrb[9].mxu0  ;;  %1118 = vmatprep.mubr.msk.f32.mxu1 %vm32_vm0, %v228_v27 }
  0xed   :  { %v1201_v37 = vpack.c.bf16 %v1091_v35, %v187_v36  ;;  %1198 = vmatprep.subr.bf16.mxu1 %v1197_v34 }
  0xef   :  { %1119 = vmatmul.mubr.msk.f32.gmra.mrb[6].mxu1 %vm32_vm0, %v229_v30  ;;  %1202 = vmatprep.subr.bf16.mxu0 %v1201_v37  ;;  %v1094_v38 = vpop.f32.mrb[10].mxu0 }
  0xf0   :  { %1204 = vmatpush3.bf16.msra.mxu0 %v1201_v37  ;;  %1125 = vmatprep.mubr.msk.f32.mxu1 %vm32_vm0, %v1310_v19  ;;  %v197_v39 = vpop.f32.mrb[11].mxu0 }
  0xf1   :  { %v1205_v40 = vpack.c.bf16 %v1094_v38, %v197_v39 }
  0xf3   :  { %1126 = vmatmul.mubr.msk.f32.vlgmr.msra.gmra.mrb[8].mxu1 %vm32_vm0, %v1319_v25  ;;  %v1097_v41 = vpop.f32.mrb[12].mxu0  ;;  %1146 = vmatmul.mubr.msk.f32.vlgmr.msra.gmra.mrb[16].mxu0 %vm32_vm0, %v1319_v25 }
  0xf4   :  { %1200 = vmatpush3.bf16.msra.mxu1 %v1197_v34  ;;  %1128 = vmatprep.mubr.msk.f32.mxu1 %vm32_vm0, %v228_v27  ;;  %v207_v42 = vpop.f32.mrb[13].mxu0 }
  0xf5   :  { %1206 = vmatprep.subr.bf16.mxu1 %v1205_v40  ;;  %v1209_v43 = vpack.c.bf16 %v1097_v41, %v207_v42  ;;  %1148 = vmatprep.mubr.msk.f32.mxu0 %vm32_vm0, %v228_v27 }
  0xf7   :  { %1129 = vmatmul.mubr.msk.f32.gmra.mrb[10].mxu1 %vm32_vm0, %v229_v30  ;;  %v1100_v44 = vpop.f32.mrb[14].mxu0  ;;  %1210 = vmatprep.subr.bf16.mxu0 %v1209_v43 }
  0xf8   :  { %1135 = vmatprep.mubr.msk.f32.mxu1 %vm32_vm0, %v1310_v19  ;;  %v217_v45 = vpop.f32.mrb[15].mxu0  ;;  %1212 = vmatpush3.bf16.msra.mxu0 %v1209_v43 }
  0xf9   :  { %v1213_v46 = vpack.c.bf16 %v1100_v44, %v217_v45  ;;  %1149 = vmatmul.mubr.msk.f32.gmra.mrb[18].mxu0 %vm32_vm0, %v229_v30 }
  0xfa   :  { %1165 = vmatprep.mubr.msk.f32.mxu0 %vm32_vm0, %v1310_v19 }
  0xfb   :  { %1136 = vmatmul.mubr.msk.f32.vlgmr.msra.gmra.mrb[12].mxu1 %vm32_vm0, %v1319_v25 }
  0xfc   :  { %1208 = vmatpush3.bf16.msra.mxu1 %v1205_v40  ;;  %1138 = vmatprep.mubr.msk.f32.mxu1 %vm32_vm0, %v228_v27 }
  0xfd   :  { %1214 = vmatprep.subr.bf16.mxu1 %v1213_v46  ;;  %1166 = vmatmul.mubr.msk.f32.vlgmr.msra.gmra.mrb[20].mxu0 %vm32_vm0, %v1319_v25 }
  0xfe   :  { %1168 = vmatprep.mubr.msk.f32.mxu0 %vm32_vm0, %v228_v27 }
  0xff   :  { %1139 = vmatmul.mubr.msk.f32.gmra.mrb[14].mxu1 %vm32_vm0, %v229_v30 }
 0x100   :  { %1155 = vmatprep.mubr.msk.f32.mxu1 %vm32_vm0, %v1310_v19 }
 0x101   :  { %1169 = vmatmul.mubr.msk.f32.gmra.mrb[22].mxu0 %vm32_vm0, %v229_v30 }
 0x103   :  { %1156 = vmatmul.mubr.msk.f32.vlgmr.msra.gmra.mrb[16].mxu1 %vm32_vm0, %v1319_v25 }
 0x104   :  { %1216 = vmatpush3.bf16.msra.mxu1 %v1213_v46  ;;  %1158 = vmatprep.mubr.msk.f32.mxu1 %vm32_vm0, %v228_v27 }
 0x107   :  { %1159 = vmatmul.mubr.msk.f32.gmra.mrb[18].mxu1 %vm32_vm0, %v229_v30 }
 0x108   :  { %1175 = vmatprep.mubr.msk.f32.mxu1 %vm32_vm0, %v1310_v19 }
 0x10b   :  { %1176 = vmatmul.mubr.msk.f32.vlgmr.msra.gmra.mrb[20].mxu1 %vm32_vm0, %v1319_v25 }
 0x10c   :  { %1178 = vmatprep.mubr.msk.f32.mxu1 %vm32_vm0, %v228_v27 }
 0x10f   :  { %1179 = vmatmul.mubr.msk.f32.gmra.mrb[22].mxu1 %vm32_vm0, %v229_v30 }
 0x1b6   :  { %v1107_v47 = vpop.f32.mrb[0].mxu1 }
 0x1b7   :  { %329 = vst.msk [vmem:[%s1502_s3 + $0x8] sm:$0xff] %vm327_vm1, %v1107_v47  ;;  %v308_v48 = vpop.f32.mrb[1].mxu1 }
 0x1b8   :  { %328 = vst.msk [vmem:[%s1502_s3] sm:$0xff] %vm327_vm1, %v308_v48 }
 0x1ba   :  { %v1110_v49 = vpop.f32.mrb[2].mxu1 }
 0x1bb   :  { %331 = vst.msk [vmem:[%s1502_s3 + $0x18] sm:$0xff] %vm327_vm1, %v1110_v49  ;;  %v318_v50 = vpop.f32.mrb[3].mxu1 }
 0x1bc   :  { %330 = vst.msk [vmem:[%s1502_s3 + $0x10] sm:$0xff] %vm327_vm1, %v318_v50 }
 0x1be   :  { %v1117_v51 = vpop.f32.mrb[4].mxu1 }
 0x1bf   :  { %418 = vst.msk [vmem:[%s1502_s3 + $0x28] sm:$0xff] %vm327_vm1, %v1117_v51  ;;  %v398_v52 = vpop.f32.mrb[5].mxu1 }
 0x1c0   :  { %417 = vst.msk [vmem:[%s1502_s3 + $0x20] sm:$0xff] %vm327_vm1, %v398_v52 }
 0x1c2   :  { %v1120_v53 = vpop.f32.mrb[6].mxu1 }
 0x1c3   :  { %420 = vst.msk [vmem:[%s1502_s3 + $0x38] sm:$0xff] %vm327_vm1, %v1120_v53  ;;  %v408_v54 = vpop.f32.mrb[7].mxu1 }
 0x1c4   :  { %419 = vst.msk [vmem:[%s1502_s3 + $0x30] sm:$0xff] %vm327_vm1, %v408_v54 }
 0x1c6   :  { %v1127_v55 = vpop.f32.mrb[8].mxu1  ;;  %v1147_v56 = vpop.f32.mrb[16].mxu0 }
 0x1c7   :  { %507 = vst.msk [vmem:[%s1502_s3 + $0x48] sm:$0xff] %vm327_vm1, %v1127_v55  ;;  %v487_v57 = vpop.f32.mrb[9].mxu1  ;;  %685 = vst.msk [vmem:[%s1502_s3 + $0x88] sm:$0xff] %vm327_vm1, %v1147_v56  ;;  %v665_v58 = vpop.f32.mrb[17].mxu0 }
 0x1c8   :  { %506 = vst.msk [vmem:[%s1502_s3 + $0x40] sm:$0xff] %vm327_vm1, %v487_v57  ;;  %684 = vst.msk [vmem:[%s1502_s3 + $0x80] sm:$0xff] %vm327_vm1, %v665_v58 }
 0x1ca   :  { %v1130_v59 = vpop.f32.mrb[10].mxu1 }
 0x1cb   :  { %509 = vst.msk [vmem:[%s1502_s3 + $0x58] sm:$0xff] %vm327_vm1, %v1130_v59  ;;  %v497_v60 = vpop.f32.mrb[11].mxu1 }
 0x1cc   :  { %508 = vst.msk [vmem:[%s1502_s3 + $0x50] sm:$0xff] %vm327_vm1, %v497_v60  ;;  %v1150_v61 = vpop.f32.mrb[18].mxu0 }
 0x1cd   :  { %687 = vst.msk [vmem:[%s1502_s3 + $0x98] sm:$0xff] %vm327_vm1, %v1150_v61  ;;  %v675_v62 = vpop.f32.mrb[19].mxu0 }
 0x1ce   :  { %v1137_v63 = vpop.f32.mrb[12].mxu1  ;;  %686 = vst.msk [vmem:[%s1502_s3 + $0x90] sm:$0xff] %vm327_vm1, %v675_v62 }
 0x1cf   :  { %596 = vst.msk [vmem:[%s1502_s3 + $0x68] sm:$0xff] %vm327_vm1, %v1137_v63  ;;  %v576_v0 = vpop.f32.mrb[13].mxu1 }
 0x1d0   :  { %595 = vst.msk [vmem:[%s1502_s3 + $0x60] sm:$0xff] %vm327_vm1, %v576_v0  ;;  %v1167_v1 = vpop.f32.mrb[20].mxu0 }
 0x1d1   :  { %863 = vst.msk [vmem:[%s1502_s3 + $0xc8] sm:$0xff] %vm327_vm1, %v1167_v1  ;;  %v843_v2 = vpop.f32.mrb[21].mxu0 }
 0x1d2   :  { %v1140_v3 = vpop.f32.mrb[14].mxu1  ;;  %862 = vst.msk [vmem:[%s1502_s3 + $0xc0] sm:$0xff] %vm327_vm1, %v843_v2 }
 0x1d3   :  { %598 = vst.msk [vmem:[%s1502_s3 + $0x78] sm:$0xff] %vm327_vm1, %v1140_v3  ;;  %v586_v4 = vpop.f32.mrb[15].mxu1 }
 0x1d4   :  { %597 = vst.msk [vmem:[%s1502_s3 + $0x70] sm:$0xff] %vm327_vm1, %v586_v4  ;;  %v1170_v5 = vpop.f32.mrb[22].mxu0 }
 0x1d5   :  { %865 = vst.msk [vmem:[%s1502_s3 + $0xd8] sm:$0xff] %vm327_vm1, %v1170_v5  ;;  %v853_v6 = vpop.f32.mrb[23].mxu0 }
 0x1d6   :  { %v1157_v7 = vpop.f32.mrb[16].mxu1  ;;  %864 = vst.msk [vmem:[%s1502_s3 + $0xd0] sm:$0xff] %vm327_vm1, %v853_v6 }
 0x1d7   :  { %774 = vst.msk [vmem:[%s1502_s3 + $0xa8] sm:$0xff] %vm327_vm1, %v1157_v7  ;;  %v754_v8 = vpop.f32.mrb[17].mxu1 }
 0x1d8   :  { %773 = vst.msk [vmem:[%s1502_s3 + $0xa0] sm:$0xff] %vm327_vm1, %v754_v8 }
 0x1da   :  { %v1160_v9 = vpop.f32.mrb[18].mxu1 }
 0x1db   :  { %776 = vst.msk [vmem:[%s1502_s3 + $0xb8] sm:$0xff] %vm327_vm1, %v1160_v9  ;;  %v764_v10 = vpop.f32.mrb[19].mxu1 }
 0x1dc   :  { %775 = vst.msk [vmem:[%s1502_s3 + $0xb0] sm:$0xff] %vm327_vm1, %v764_v10 }
 0x1de   :  { %v1177_v11 = vpop.f32.mrb[20].mxu1 }
 0x1df   :  { %952 = vst.msk [vmem:[%s1502_s3 + $0xe8] sm:$0xff] %vm327_vm1, %v1177_v11  ;;  %v932_v12 = vpop.f32.mrb[21].mxu1 }
 0x1e0   :  { %951 = vst.msk [vmem:[%s1502_s3 + $0xe0] sm:$0xff] %vm327_vm1, %v932_v12 }
 0x1e2   :  { %v1180_v13 = vpop.f32.mrb[22].mxu1 }
 0x1e3   :  { %954 = vst.msk [vmem:[%s1502_s3 + $0xf8] sm:$0xff] %vm327_vm1, %v1180_v13  ;;  %v942_v14 = vpop.f32.mrb[23].mxu1 }
 0x1e4   :  { %953 = vst.msk [vmem:[%s1502_s3 + $0xf0] sm:$0xff] %vm327_vm1, %v942_v14 }

</bundles_post_ra>
